<compile_context>
chip_gen: v7x
topology: tpu7x:2x2x1
jax: 0.10.0
libtpu: 0.0.40
codegen_flags: <defaults>
</compile_context>

<pallas_src>
import functools

import jax
import jax.numpy as jnp
from jax import lax
from jax.experimental import pallas as pl
from jax.experimental.pallas import tpu as pltpu


def _plan_time_tiling(T, time_tile):
    """Pick (tile_cols, num_tiles).  tile is a multiple of 128 when tiling."""
    if time_tile is None:
        time_tile = 8192        # tiny VMEM footprint, amortises per-step overhead
    if T <= time_tile:
        return T, 1             # single tile: block spans the full time axis
    tile = max(128, (time_tile // 128) * 128)   # lane-dense, unmasked stores
    return tile, -(-T // tile)


# --------------------------------------------------------------------------
# Fused kernel: all TCN blocks + 1x1 head + sigmoid for one (batch, time-tile)
# --------------------------------------------------------------------------
def _make_fused_tcn_kernel(*, ksize, dilations, receptive, time_tile, multi_tile):
    """Refs (in order):
         x_ref             (1, Cin0, tile)     raw input tile, native NCW layout
         (w_l, b_l) per l  (K, Cout, Cin_l), (Cout, 1)
         head_w, head_b    (1, C), (1, 1)
         o_ref             (1, 1, tile)
         halo_ref          (Cin0, receptive)   VMEM scratch (only when multi_tile)
       Everything is channel-major: channels on sublanes, time on lanes.
    """
    num_layers = len(dilations)
    K = ksize
    rpad = receptive

    def kernel(*refs):
        x_ref = refs[0]
        layer_refs = [(refs[1 + 2 * l], refs[2 + 2 * l]) for l in range(num_layers)]
        i = 1 + 2 * num_layers
        head_w_ref, head_b_ref, o_ref = refs[i], refs[i + 1], refs[i + 2]
        halo_ref = refs[i + 3] if (rpad > 0 and multi_tile) else None

        t_idx = pl.program_id(1)
        x_now = x_ref[0].astype(jnp.float32)                       # (Cin0, tile)

        # Left context = last `receptive` raw columns of the previous tile
        # (zeros at t==0 == the causal zero padding of the PyTorch conv).
        if rpad > 0:
            if multi_tile:
                @pl.when(t_idx == 0)
                def _():
                    halo_ref[...] = jnp.zeros_like(halo_ref)
                a = jnp.concatenate([halo_ref[...], x_now], axis=1)  # (Cin0, rpad+tile)
                # Save this tile's tail for the next tile.  Lane offset `tile`
                # is a multiple of 128 -> aligned slice.
                halo_ref[...] = a[:, time_tile:]
            else:
                zeros = jnp.zeros((x_now.shape[0], rpad), jnp.float32)
                a = jnp.concatenate([zeros, x_now], axis=1)
        else:
            a = x_now

        full_len = rpad + time_tile
        # Hoisted once (JAX does not CSE broadcast_in_dim): lane positions.
        col_iota = lax.broadcasted_iota(jnp.int32, (1, full_len), 1)
        t_off = t_idx * time_tile

        cur_len = full_len
        ctx_used = 0
        for l in range(num_layers):
            d = dilations[l]
            w_ref, b_ref = layer_refs[l]
            new_len = cur_len - (K - 1) * d

            # Causal dilated conv as K small MXU matmuls accumulated in f32:
            # tap m multiplies the activation shifted left by m*d columns.
            acc = jnp.dot(w_ref[0], a[:, :new_len],
                          preferred_element_type=jnp.float32)
            for m in range(1, K):
                acc = acc + jnp.dot(w_ref[m], a[:, m * d:m * d + new_len],
                                    preferred_element_type=jnp.float32)
            y = acc + b_ref[...].astype(jnp.float32)

            # ELU(alpha=1); clamp so the discarded branch cannot overflow.
            y = jnp.where(y > 0, y, jnp.exp(jnp.minimum(y, 0.0)) - 1.0)

            ctx_used += (K - 1) * d
            # Columns of this activation lying before t=0 are the NEXT layer's
            # causal zero padding -> zero them (matches the per-layer Conv1d pad).
            pad_cols = rpad - ctx_used
            if l + 1 < num_layers and pad_cols > 0:
                keep = (col_iota[:, :new_len] + t_off) >= pad_cols
                y = jnp.where(keep, y, 0.0)

            a = y
            cur_len = new_len

        # cur_len == time_tile: columns map 1:1 onto this tile's output times.
        # TODO(synk): nn.Dropout(p=0.1) treated as identity (inference mode).
        z = jnp.dot(head_w_ref[...].astype(jnp.float32), a,
                    preferred_element_type=jnp.float32)            # (1, tile)
        z = z + head_b_ref[...].astype(jnp.float32)
        o_ref[0] = (1.0 / (1.0 + jnp.exp(-z))).astype(o_ref.dtype)  # lane-dense store

    return kernel


# --------------------------------------------------------------------------
# Wrapper: tiling plan + pallas_call plumbing (no transpose / gather / left-pad)
# --------------------------------------------------------------------------
def tcn_forward(x_nct, kparams, *, time_tile=None):
    """Fused TCN forward.  In: (B, input_dim, T) -> Out: (B, 1, T)."""
    B, cin0, T = x_nct.shape
    layers = kparams["layers"]
    num_layers = len(layers)
    K = layers[0][0].shape[0]
    dilations = tuple(2 ** i for i in range(num_layers))   # static, as in the module
    receptive = sum((K - 1) * d for d in dilations)        # stack's causal left context

    tile, num_tiles = _plan_time_tiling(T, time_tile)
    t_total = tile * num_tiles
    multi_tile = num_tiles > 1

    x = x_nct
    if t_total > T:
        # Only remaining wrapper-side copy, and only when T % tile != 0:
        # right-pad the (tiny, Cin0-channel) raw input to a whole tile count.
        x = jnp.pad(x, ((0, 0), (0, 0), (0, t_total - T)))

    inputs = [x]
    in_specs = [pl.BlockSpec((1, cin0, tile), lambda b, t: (b, 0, t))]
    for w, bias in layers:            # weights/biases: whole-array resident blocks
        inputs += [w, bias]
        in_specs += [pl.BlockSpec(w.shape, lambda b, t: (0, 0, 0)),
                     pl.BlockSpec(bias.shape, lambda b, t: (0, 0))]
    inputs += [kparams["head_w"], kparams["head_b"]]
    in_specs += [pl.BlockSpec(kparams["head_w"].shape, lambda b, t: (0, 0)),
                 pl.BlockSpec(kparams["head_b"].shape, lambda b, t: (0, 0))]

    scratch_shapes = []
    if receptive > 0 and multi_tile:
        scratch_shapes.append(pltpu.VMEM((cin0, receptive), jnp.float32))

    kernel = _make_fused_tcn_kernel(
        ksize=K, dilations=dilations, receptive=receptive,
        time_tile=tile, multi_tile=multi_tile)

    out = pl.pallas_call(
        kernel,
        out_shape=jax.ShapeDtypeStruct((B, 1, t_total), x_nct.dtype),
        grid=(B, num_tiles),
        in_specs=in_specs,
        # Lane-dense output block: time on the 128-lane axis, unmasked stores.
        out_specs=pl.BlockSpec((1, 1, tile), lambda b, t: (b, 0, t)),
        scratch_shapes=scratch_shapes,
        compiler_params=pltpu.CompilerParams(
            # Batch is parallel (v7x megacore); time carries the halo state.
            dimension_semantics=("parallel", "arbitrary"),
            vmem_limit_bytes=32 * 1024 * 1024),
    )(*inputs)

    return out[:, :, :T] if t_total > T else out


# --------------------------------------------------------------------------
# Parameters (PyTorch layout) + one-time conversion to the kernel layout
# --------------------------------------------------------------------------
def init_tcn_params(key, input_dim, num_filters, kernel_size, num_layers):
    """PyTorch-layout params: blocks[i] = (w (Cout,Cin,K), b (Cout,)); 1x1 head."""
    blocks = []
    for i in range(num_layers):
        in_ch = input_dim if i == 0 else num_filters
        key, kw, kb = jax.random.split(key, 3)
        bound = 1.0 / (in_ch * kernel_size) ** 0.5
        w = jax.random.uniform(kw, (num_filters, in_ch, kernel_size),
                               jnp.float32, -bound, bound)
        b = jax.random.uniform(kb, (num_filters,), jnp.float32, -bound, bound)
        blocks.append((w, b))
    key, kw, kb = jax.random.split(key, 3)
    bound = 1.0 / num_filters ** 0.5
    out_w = jax.random.uniform(kw, (1, num_filters, 1), jnp.float32, -bound, bound)
    out_b = jax.random.uniform(kb, (1,), jnp.float32, -bound, bound)
    return {"blocks": blocks, "out_w": out_w, "out_b": out_b}


def prepare_tcn_params(pt_params):
    """One-time conversion (outside the forward path) to the kernel layout.

    Dilations are NOT stored in the pytree -- they are 2**layer (static), so
    they never enter jit tracing.
    """
    layers = []
    for w, b in pt_params["blocks"]:
        layers.append((jnp.transpose(w, (2, 0, 1)),    # (K, Cout, Cin), tap-major
                       b.reshape(-1, 1)))              # (Cout, 1): broadcasts over lanes
    head_w = pt_params["out_w"][:, :, 0]               # (1, C)
    head_b = pt_params["out_b"].reshape(1, 1)
    return {"layers": layers, "head_w": head_w, "head_b": head_b}


# --------------------------------------------------------------------------
# Pure-JAX reference (independent of the kernel) for correctness checking
# --------------------------------------------------------------------------
def tcn_reference(x_nct, pt_params):
    x = x_nct.astype(jnp.float32)
    for i, (w, b) in enumerate(pt_params["blocks"]):
        d = 2 ** i
        K = w.shape[2]
        pad = (K - 1) * d
        y = lax.conv_general_dilated(
            x, w, window_strides=(1,), padding=[(pad, 0)], rhs_dilation=(d,),
            dimension_numbers=("NCH", "OIH", "NCH"),
            precision=lax.Precision.HIGHEST)
        y = y + b[None, :, None]
        x = jnp.where(y > 0, y, jnp.exp(y) - 1.0)        # ELU(alpha=1)
    ow, ob = pt_params["out_w"], pt_params["out_b"]      # (1, C, 1), (1,)
    z = jnp.einsum("bct,c->bt", x, ow[0, :, 0],
                   precision=lax.Precision.HIGHEST) + ob[0]
    return jax.nn.sigmoid(z)[:, None, :]                 # (B, 1, T)


# --------------------------------------------------------------------------
if __name__ == "__main__":
    def _run_case(B, input_dim, T, num_filters, kernel_size, num_layers,
                  time_tile, tol=1e-4):
        key = jax.random.PRNGKey(0)
        key, kx = jax.random.split(key)
        x = jax.random.normal(kx, (B, input_dim, T), jnp.float32)
        pt_params = init_tcn_params(key, input_dim, num_filters, kernel_size,
                                    num_layers)
        kparams = prepare_tcn_params(pt_params)

        fwd = jax.jit(functools.partial(tcn_forward, time_tile=time_tile))
        out = jax.block_until_ready(fwd(x, kparams))
        assert out.shape == (B, 1, T), out.shape

        ref = tcn_reference(x, pt_params)
        err = float(jnp.max(jnp.abs(out - ref)))
        assert err < tol, f"mismatch vs reference: max abs err = {err}"

    # Small case: single time tile per batch element.
    _run_case(B=2, input_dim=4, T=16, num_filters=32, kernel_size=3,
              num_layers=2, time_tile=None)
    # Tiled time axis: exercises the carried-halo scratch across 3 tiles.
    _run_case(B=2, input_dim=4, T=384, num_filters=32, kernel_size=3,
              num_layers=3, time_tile=128)
    # Deep stack: receptive field (510) > tile (128) and T not a multiple of
    # the tile (exercises the right-pad path and cross-tile zero masking).
    _run_case(B=2, input_dim=4, T=300, num_filters=32, kernel_size=3,
              num_layers=8, time_tile=128, tol=5e-4)

    print("KERNEL_OK")
</pallas_src>

<mosaic_0001>
module attributes {stable_mosaic.version = 11 : i64} {
  func.func @kernel(%arg0: i32, %arg1: i32, %arg2: memref<1x4x16xf32, #tpu.memory_space<vmem>>, %arg3: memref<3x32x4xf32, #tpu.memory_space<vmem>>, %arg4: memref<32x1xf32, #tpu.memory_space<vmem>>, %arg5: memref<3x32x32xf32, #tpu.memory_space<vmem>>, %arg6: memref<32x1xf32, #tpu.memory_space<vmem>>, %arg7: memref<1x32xf32, #tpu.memory_space<vmem>>, %arg8: memref<1x1xf32, #tpu.memory_space<vmem>>, %arg9: memref<1x1x16xf32, #tpu.memory_space<vmem>>) attributes {dimension_semantics = [#tpu.dimension_semantics<parallel>, #tpu.dimension_semantics<arbitrary>], iteration_bounds = array<i64: 2, 1>, scalar_prefetch = 0 : i64, scratch_operands = 0 : i64, tpu.core_type = #tpu.core_type<tc>, window_params = [{transform_indices = @transform_0, window_bounds = array<i64: 1, 4, 16>}, {pipeline_mode = #tpu.pipeline_mode<synchronous>, transform_indices = @transform_1, window_bounds = array<i64: 3, 32, 4>}, {pipeline_mode = #tpu.pipeline_mode<synchronous>, transform_indices = @transform_2, window_bounds = array<i64: 32, 1>}, {pipeline_mode = #tpu.pipeline_mode<synchronous>, transform_indices = @transform_3, window_bounds = array<i64: 3, 32, 32>}, {pipeline_mode = #tpu.pipeline_mode<synchronous>, transform_indices = @transform_4, window_bounds = array<i64: 32, 1>}, {pipeline_mode = #tpu.pipeline_mode<synchronous>, transform_indices = @transform_5, window_bounds = array<i64: 1, 32>}, {pipeline_mode = #tpu.pipeline_mode<synchronous>, transform_indices = @transform_6, window_bounds = array<i64: 1, 1>}, {transform_indices = @transform_7, window_bounds = array<i64: 1, 1, 16>}]} {
    %c0 = arith.constant 0 : index
    %c0_0 = arith.constant 0 : index
    %c0_1 = arith.constant 0 : index
    %0 = vector.load %arg2[%c0, %c0_0, %c0_1] : memref<1x4x16xf32, #tpu.memory_space<vmem>>, vector<1x4x16xf32>
    %1 = vector.shape_cast %0 : vector<1x4x16xf32> to vector<4x16xf32>
    %cst = arith.constant 0.000000e+00 : f32
    %2 = vector.broadcast %cst : f32 to vector<4x6xf32>
    %3 = tpu.concatenate %2, %1 in 1 : vector<4x6xf32>, vector<4x16xf32> -> vector<4x22xf32>
    %4 = tpu.iota {dimensions = array<i32: 1>} : vector<1x22xi32>
    %c16_i32 = arith.constant 16 : i32
    %5 = arith.muli %arg1, %c16_i32 : i32
    %c0_2 = arith.constant 0 : index
    %c0_3 = arith.constant 0 : index
    %c0_4 = arith.constant 0 : index
    %6 = vector.load %arg3[%c0_2, %c0_3, %c0_4] : memref<3x32x4xf32, #tpu.memory_space<vmem>>, vector<1x32x4xf32>
    %7 = vector.shape_cast %6 : vector<1x32x4xf32> to vector<32x4xf32>
    %8 = vector.extract_strided_slice %3 {offsets = [0, 0], sizes = [4, 20], strides = [1, 1]} : vector<4x22xf32> to vector<4x20xf32>
    %cst_5 = arith.constant dense<0.000000e+00> : vector<32x20xf32>
    %9 = tpu.matmul %7, %8, %cst_5 {dimension_numbers = #tpu.dot_dimension_numbers<[1], [0], [0], [1], [0, 0, 1, 1], [], []>} : vector<32x4xf32>, vector<4x20xf32>, vector<32x20xf32> -> vector<32x20xf32>
    %c1 = arith.constant 1 : index
    %c0_6 = arith.constant 0 : index
    %c0_7 = arith.constant 0 : index
    %10 = vector.load %arg3[%c1, %c0_6, %c0_7] : memref<3x32x4xf32, #tpu.memory_space<vmem>>, vector<1x32x4xf32>
    %11 = vector.shape_cast %10 : vector<1x32x4xf32> to vector<32x4xf32>
    %12 = vector.extract_strided_slice %3 {offsets = [0, 1], sizes = [4, 20], strides = [1, 1]} : vector<4x22xf32> to vector<4x20xf32>
    %cst_8 = arith.constant dense<0.000000e+00> : vector<32x20xf32>
    %13 = tpu.matmul %11, %12, %cst_8 {dimension_numbers = #tpu.dot_dimension_numbers<[1], [0], [0], [1], [0, 0, 1, 1], [], []>} : vector<32x4xf32>, vector<4x20xf32>, vector<32x20xf32> -> vector<32x20xf32>
    %14 = arith.addf %9, %13 : vector<32x20xf32>
    %c2 = arith.constant 2 : index
    %c0_9 = arith.constant 0 : index
    %c0_10 = arith.constant 0 : index
    %15 = vector.load %arg3[%c2, %c0_9, %c0_10] : memref<3x32x4xf32, #tpu.memory_space<vmem>>, vector<1x32x4xf32>
    %16 = vector.shape_cast %15 : vector<1x32x4xf32> to vector<32x4xf32>
    %17 = vector.extract_strided_slice %3 {offsets = [0, 2], sizes = [4, 20], strides = [1, 1]} : vector<4x22xf32> to vector<4x20xf32>
    %cst_11 = arith.constant dense<0.000000e+00> : vector<32x20xf32>
    %18 = tpu.matmul %16, %17, %cst_11 {dimension_numbers = #tpu.dot_dimension_numbers<[1], [0], [0], [1], [0, 0, 1, 1], [], []>} : vector<32x4xf32>, vector<4x20xf32>, vector<32x20xf32> -> vector<32x20xf32>
    %19 = arith.addf %14, %18 : vector<32x20xf32>
    %c0_12 = arith.constant 0 : index
    %c0_13 = arith.constant 0 : index
    %20 = vector.load %arg4[%c0_12, %c0_13] : memref<32x1xf32, #tpu.memory_space<vmem>>, vector<32x1xf32>
    %21 = vector.broadcast %20 : vector<32x1xf32> to vector<32x20xf32>
    %22 = arith.addf %19, %21 : vector<32x20xf32>
    %cst_14 = arith.constant 0.000000e+00 : f32
    %23 = vector.broadcast %cst_14 : f32 to vector<32x20xf32>
    %24 = arith.cmpf ogt, %22, %23 : vector<32x20xf32>
    %cst_15 = arith.constant 0.000000e+00 : f32
    %25 = vector.broadcast %cst_15 : f32 to vector<32x20xf32>
    %26 = arith.minimumf %22, %25 : vector<32x20xf32>
    %27 = math.exp %26 : vector<32x20xf32>
    %cst_16 = arith.constant 1.000000e+00 : f32
    %28 = vector.broadcast %cst_16 : f32 to vector<32x20xf32>
    %29 = arith.subf %27, %28 : vector<32x20xf32>
    %30 = arith.select %24, %22, %29 : vector<32x20xi1>, vector<32x20xf32>
    %31 = vector.extract_strided_slice %4 {offsets = [0, 0], sizes = [1, 20], strides = [1, 1]} : vector<1x22xi32> to vector<1x20xi32>
    %32 = vector.broadcast %5 : i32 to vector<1x20xi32>
    %33 = arith.addi %31, %32 : vector<1x20xi32>
    %c4_i32 = arith.constant 4 : i32
    %34 = vector.broadcast %c4_i32 : i32 to vector<1x20xi32>
    %35 = arith.cmpi sge, %33, %34 : vector<1x20xi32>
    %cst_17 = arith.constant 0.000000e+00 : f32
    %36 = vector.shape_cast %35 : vector<1x20xi1> to vector<1x20xi1>
    %37 = vector.broadcast %36 : vector<1x20xi1> to vector<32x20xi1>
    %38 = vector.broadcast %cst_17 : f32 to vector<32x20xf32>
    %39 = arith.select %37, %30, %38 : vector<32x20xi1>, vector<32x20xf32>
    %c0_18 = arith.constant 0 : index
    %c0_19 = arith.constant 0 : index
    %c0_20 = arith.constant 0 : index
    %40 = vector.load %arg5[%c0_18, %c0_19, %c0_20] : memref<3x32x32xf32, #tpu.memory_space<vmem>>, vector<1x32x32xf32>
    %41 = vector.shape_cast %40 : vector<1x32x32xf32> to vector<32x32xf32>
    %42 = vector.extract_strided_slice %39 {offsets = [0, 0], sizes = [32, 16], strides = [1, 1]} : vector<32x20xf32> to vector<32x16xf32>
    %cst_21 = arith.constant dense<0.000000e+00> : vector<32x16xf32>
    %43 = tpu.matmul %41, %42, %cst_21 {dimension_numbers = #tpu.dot_dimension_numbers<[1], [0], [0], [1], [0, 0, 1, 1], [], []>} : vector<32x32xf32>, vector<32x16xf32>, vector<32x16xf32> -> vector<32x16xf32>
    %c1_22 = arith.constant 1 : index
    %c0_23 = arith.constant 0 : index
    %c0_24 = arith.constant 0 : index
    %44 = vector.load %arg5[%c1_22, %c0_23, %c0_24] : memref<3x32x32xf32, #tpu.memory_space<vmem>>, vector<1x32x32xf32>
    %45 = vector.shape_cast %44 : vector<1x32x32xf32> to vector<32x32xf32>
    %46 = vector.extract_strided_slice %39 {offsets = [0, 2], sizes = [32, 16], strides = [1, 1]} : vector<32x20xf32> to vector<32x16xf32>
    %cst_25 = arith.constant dense<0.000000e+00> : vector<32x16xf32>
    %47 = tpu.matmul %45, %46, %cst_25 {dimension_numbers = #tpu.dot_dimension_numbers<[1], [0], [0], [1], [0, 0, 1, 1], [], []>} : vector<32x32xf32>, vector<32x16xf32>, vector<32x16xf32> -> vector<32x16xf32>
    %48 = arith.addf %43, %47 : vector<32x16xf32>
    %c2_26 = arith.constant 2 : index
    %c0_27 = arith.constant 0 : index
    %c0_28 = arith.constant 0 : index
    %49 = vector.load %arg5[%c2_26, %c0_27, %c0_28] : memref<3x32x32xf32, #tpu.memory_space<vmem>>, vector<1x32x32xf32>
    %50 = vector.shape_cast %49 : vector<1x32x32xf32> to vector<32x32xf32>
    %51 = vector.extract_strided_slice %39 {offsets = [0, 4], sizes = [32, 16], strides = [1, 1]} : vector<32x20xf32> to vector<32x16xf32>
    %cst_29 = arith.constant dense<0.000000e+00> : vector<32x16xf32>
    %52 = tpu.matmul %50, %51, %cst_29 {dimension_numbers = #tpu.dot_dimension_numbers<[1], [0], [0], [1], [0, 0, 1, 1], [], []>} : vector<32x32xf32>, vector<32x16xf32>, vector<32x16xf32> -> vector<32x16xf32>
    %53 = arith.addf %48, %52 : vector<32x16xf32>
    %c0_30 = arith.constant 0 : index
    %c0_31 = arith.constant 0 : index
    %54 = vector.load %arg6[%c0_30, %c0_31] : memref<32x1xf32, #tpu.memory_space<vmem>>, vector<32x1xf32>
    %55 = vector.broadcast %54 : vector<32x1xf32> to vector<32x16xf32>
    %56 = arith.addf %53, %55 : vector<32x16xf32>
    %cst_32 = arith.constant 0.000000e+00 : f32
    %57 = vector.broadcast %cst_32 : f32 to vector<32x16xf32>
    %58 = arith.cmpf ogt, %56, %57 : vector<32x16xf32>
    %cst_33 = arith.constant 0.000000e+00 : f32
    %59 = vector.broadcast %cst_33 : f32 to vector<32x16xf32>
    %60 = arith.minimumf %56, %59 : vector<32x16xf32>
    %61 = math.exp %60 : vector<32x16xf32>
    %cst_34 = arith.constant 1.000000e+00 : f32
    %62 = vector.broadcast %cst_34 : f32 to vector<32x16xf32>
    %63 = arith.subf %61, %62 : vector<32x16xf32>
    %64 = arith.select %58, %56, %63 : vector<32x16xi1>, vector<32x16xf32>
    %c0_35 = arith.constant 0 : index
    %c0_36 = arith.constant 0 : index
    %65 = vector.load %arg7[%c0_35, %c0_36] : memref<1x32xf32, #tpu.memory_space<vmem>>, vector<1x32xf32>
    %cst_37 = arith.constant dense<0.000000e+00> : vector<1x16xf32>
    %66 = tpu.matmul %65, %64, %cst_37 {dimension_numbers = #tpu.dot_dimension_numbers<[1], [0], [0], [1], [0, 0, 1, 1], [], []>} : vector<1x32xf32>, vector<32x16xf32>, vector<1x16xf32> -> vector<1x16xf32>
    %c0_38 = arith.constant 0 : index
    %c0_39 = arith.constant 0 : index
    %67 = vector.load %arg8[%c0_38, %c0_39] : memref<1x1xf32, #tpu.memory_space<vmem>>, vector<1x1xf32>
    %68 = vector.broadcast %67 : vector<1x1xf32> to vector<1x16xf32>
    %69 = arith.addf %66, %68 : vector<1x16xf32>
    %cst_40 = arith.constant 0.000000e+00 : f32
    %70 = vector.broadcast %cst_40 : f32 to vector<1x16xf32>
    %71 = arith.subf %70, %69 : vector<1x16xf32>
    %72 = math.exp %71 : vector<1x16xf32>
    %cst_41 = arith.constant 1.000000e+00 : f32
    %73 = vector.broadcast %cst_41 : f32 to vector<1x16xf32>
    %74 = arith.addf %73, %72 : vector<1x16xf32>
    %cst_42 = arith.constant 1.000000e+00 : f32
    %75 = vector.broadcast %cst_42 : f32 to vector<1x16xf32>
    %76 = arith.divf %75, %74 : vector<1x16xf32>
    %c0_43 = arith.constant 0 : index
    %c0_44 = arith.constant 0 : index
    %c0_45 = arith.constant 0 : index
    %77 = vector.load %arg9[%c0_43, %c0_44, %c0_45] : memref<1x1x16xf32, #tpu.memory_space<vmem>>, vector<1x1x16xf32>
    %78 = vector.shape_cast %77 : vector<1x1x16xf32> to vector<1x16xf32>
    %79 = vector.shape_cast %76 : vector<1x16xf32> to vector<1x1x16xf32>
    tpu.vector_store %arg9[%c0_43, %c0_44, %c0_45], %79 {strides = array<i32>} : memref<1x1x16xf32, #tpu.memory_space<vmem>>, vector<1x1x16xf32>,
    return
  }
  func.func @transform_0(%arg0: i32, %arg1: i32) -> (i32, i32, i32) {
    %c0_i32 = arith.constant 0 : i32
    %c0_i32_0 = arith.constant 0 : i32
    return %arg0, %c0_i32, %arg1 : i32, i32, i32
  }
  func.func @transform_1(%arg0: i32, %arg1: i32) -> (i32, i32, i32) {
    %c0_i32 = arith.constant 0 : i32
    %c0_i32_0 = arith.constant 0 : i32
    %c0_i32_1 = arith.constant 0 : i32
    %c0_i32_2 = arith.constant 0 : i32
    return %c0_i32, %c0_i32_0, %c0_i32_1 : i32, i32, i32
  }
  func.func @transform_2(%arg0: i32, %arg1: i32) -> (i32, i32) {
    %c0_i32 = arith.constant 0 : i32
    %c0_i32_0 = arith.constant 0 : i32
    %c0_i32_1 = arith.constant 0 : i32
    return %c0_i32, %c0_i32_0 : i32, i32
  }
  func.func @transform_3(%arg0: i32, %arg1: i32) -> (i32, i32, i32) {
    %c0_i32 = arith.constant 0 : i32
    %c0_i32_0 = arith.constant 0 : i32
    %c0_i32_1 = arith.constant 0 : i32
    %c0_i32_2 = arith.constant 0 : i32
    return %c0_i32, %c0_i32_0, %c0_i32_1 : i32, i32, i32
  }
  func.func @transform_4(%arg0: i32, %arg1: i32) -> (i32, i32) {
    %c0_i32 = arith.constant 0 : i32
    %c0_i32_0 = arith.constant 0 : i32
    %c0_i32_1 = arith.constant 0 : i32
    return %c0_i32, %c0_i32_0 : i32, i32
  }
  func.func @transform_5(%arg0: i32, %arg1: i32) -> (i32, i32) {
    %c0_i32 = arith.constant 0 : i32
    %c0_i32_0 = arith.constant 0 : i32
    %c0_i32_1 = arith.constant 0 : i32
    return %c0_i32, %c0_i32_0 : i32, i32
  }
  func.func @transform_6(%arg0: i32, %arg1: i32) -> (i32, i32) {
    %c0_i32 = arith.constant 0 : i32
    %c0_i32_0 = arith.constant 0 : i32
    %c0_i32_1 = arith.constant 0 : i32
    return %c0_i32, %c0_i32_0 : i32, i32
  }
  func.func @transform_7(%arg0: i32, %arg1: i32) -> (i32, i32, i32) {
    %c0_i32 = arith.constant 0 : i32
    %c0_i32_0 = arith.constant 0 : i32
    return %arg0, %c0_i32, %arg1 : i32, i32, i32
  }
}

</mosaic_0001>

<bundles_post_ra>
// kernel: tcn_forward.1
= control target key start
LH: loop header
LB: loop body
LE: loop exit
PB: predicated region body
PF: predicated region fallthrough
CT: control target
= control target key end

     0   :  { %s1994_s0 = inlined_call_operand.vmem [shape: f32[2,4,16], index: 0, kind: input, shape index: {}]   ;;  %s1995_s1 = inlined_call_operand.vmem [shape: f32[3,32,4], index: 1, kind: input, shape index: {}]   ;;  %s1996_s2 = inlined_call_operand.vmem [shape: f32[32,1], index: 2, kind: input, shape index: {}]   ;;  %s1997_s3 = inlined_call_operand.vmem [shape: f32[3,32,32], index: 3, kind: input, shape index: {}]   ;;  %s1998_s4 = inlined_call_operand.vmem [shape: f32[32,1], index: 4, kind: input, shape index: {}]   ;;  %s1999_s5 = inlined_call_operand.vmem [shape: f32[1,32], index: 5, kind: input, shape index: {}]   ;;  %s2000_s6 = inlined_call_operand.<no memory space> [shape: f32[1,1], index: 6, kind: input, shape index: {}]   ;;  %s2001_s7 = inlined_call_operand.hbm [shape: f32[2,1,16], index: 7, kind: output, shape index: {}]  }
   0x1   :  { %v12_v0 = vstv %s2000_s6 }
   0x2   :  { %13 = vst [vmem:[#allocation2] sm:$0x1] %v12_v0 }
   0x3   :  { %14 = vsyncpa [#allocation4], 0 }
   0x4   :  { %16 = vsyncpa [#allocation4 + $0x1], 0  ;;  %s1729_s26 = smov 0   ;;  %s1731_s27 = smov 0  }
   0x5   :  { %s1733_s28 = smov 0   ;;  %s1735_s29 = smov 0  }
   0x6   :  { %s1737_s30 = smov 0   ;;  %s1739_s8 = smov 0  }
   0x7 LB: > { %s1256_s6 = sadd.s32 4294967295, %s1675_s8   ;;  %s1257_s9 = sadd.s32 4294967294, %s1675_s8   ;;  %s1675_s8 = sphi %s1739_s8, %s22_s8   ;;  %s1671_s30 = sphi %s1737_s30, %s2010_s30   ;;  %s1667_s29 = sphi %s1735_s29, %s2009_s29   ;;  %s1663_s28 = sphi %s1733_s28, %s2008_s28   ;;  %s1659_s27 = sphi %s1731_s27, %s2007_s27   ;;  %s1655_s26 = sphi %s1729_s26, %s2006_s26  }
   0x8   : > { %s34_s10 = sadd.s32 1, %s1671_s30  ;;  %s197_s11 = sadd.s32 1, %s1663_s28 }
   0x9   : > { %p36_p0 = scmp.ge.s32.totalorder %s34_s10, 2  ;;  %p207_p1 = scmp.ne.s32.totalorder %s1663_s28, %s1659_s27 }
   0xa   : > { %p208_p2 = scmp.eq.s32.totalorder %s1256_s6, 1  ;;  %p213_p3 = scmp.ne.s32.totalorder %s1659_s27, %s1655_s26 }
   0xb   : > { %s2012_s10 = smov (%p36_p0, %s34_s10), 0  ;;  %p214_p5 = scmp.eq.s32.totalorder %s1257_s9, 1 }
   0xc   : > { %p1769_p4 = por %p208_p2, %p207_p1  ;;  %s192_s13 = ssub.s32 %s1671_s30, %s2012_s10 }
   0xd   : > { %p1260_p6 = scmp.ge.s32.totalorder %s1675_s8, 1  ;;  %p195_p7 = scmp.eq.s32.totalorder %s192_s13, 0 }
   0xe   : > { %p1776_p8 = por %p214_p5, %p213_p3  ;;  %p260_p9 = scmp.lt.s32.totalorder %s1675_s8, 3 }
   0xf   : > { %s1782_s15 = scalar_select %p195_p7, %s1663_s28, %s197_s11  }
  0x10   : > { %p261_p10 = pnand %p1260_p6, %p260_p9 }
  0x11   : > { %p293_p11 = scmp.lt.s32.totalorder (!%p261_p10), %s1667_s29, 1  ;;  %s1677_s21 = smov (!%p261_p10), 6   ;;  %v1262_v2 = vld [vmem:[%s1995_s1 + $0x20] sm:$0xff] (!%p261_p10)  ;;  %vm322_vm0 = vcmask (!%p261_p10), 31744   ;;  %vm305_vm1 = vcmask (!%p261_p10), 48128   ;;  %v1680_v6 = vmov (!%p261_p10), 0   ;;  %v307_v43 = vlaneseq (!%p261_p10) }
  0x12   : > { %264 = sbr.rel (%p261_p10) target bundleno = 1156 (0x484), region = 48  ;;  %1367 = vmatprep.mubr.msk.f32.mxu0 (!%p261_p10), %vm322_vm0, %v1262_v2  ;;  %s1678_s24 = smov (!%p261_p10), 126   ;;  %v632_v5 = vld [vmem:[%s1996_s2] sm:$0xff] (!%p261_p10)  ;;  %1555 = vset.pattern.permute.xlu1 (!%p261_p10), %v1680_v6  ;;  %v633_v7 = vld [vmem:[%s1996_s2 + $0x8] sm:$0xff] (!%p261_p10)  ;;  %v634_v8 = vld [vmem:[%s1996_s2 + $0x10] sm:$0xff] (!%p261_p10)  ;;  %vm335_vm2 = vcmask (!%p261_p10), 1043456  }
  0x13   : > { %s1679_s25 = smov (!%p261_p10), 127   ;;  %1556 = vset.pattern.permute.xlu0 (!%p261_p10), %v1680_v6  ;;  %v635_v9 = vld [vmem:[%s1996_s2 + $0x18] sm:$0xff] (!%p261_p10)  ;;  %v1263_v11 = vld [vmem:[%s1995_s1 + $0x28] sm:$0xff] (!%p261_p10)  ;;  %v1264_v12 = vld [vmem:[%s1995_s1 + $0x30] sm:$0xff] (!%p261_p10)  ;;  %v308_v44 = vand.u32 (!%p261_p10), 127, %v307_v43  ;;  %vm718_vm6 = vcmask (!%p261_p10), 261120  }
  0x14   : > { %v1265_v14 = vld [vmem:[%s1995_s1 + $0x38] sm:$0xff] (!%p261_p10)  ;;  %v310_v15 = vld [vmem:[%s1995_s1] sm:$0xff] (!%p261_p10)  ;;  %v311_v16 = vld [vmem:[%s1995_s1 + $0x8] sm:$0xff] (!%p261_p10)  ;;  %s1681_s18 = smov (!%p261_p10), 124   ;;  %vm1683_vm10 = vmmov (!%p261_p10), 0   ;;  %s291_s23 = sand.u32 (!%p261_p10), 1, %s1659_s27  }
  0x15   : > { %v312_v17 = vld [vmem:[%s1995_s1 + $0x10] sm:$0xff] (!%p261_p10)  ;;  %v313_v18 = vld [vmem:[%s1995_s1 + $0x18] sm:$0xff] (!%p261_p10)  ;;  %v1276_v19 = vld [vmem:[%s1995_s1 + $0x40] sm:$0xff] (!%p261_p10)  ;;  %vm686_vm3 = vcmp.ge.s32.totalorder (!%p261_p10), %v308_v44, 4  ;;  %s292_s6 = scalar_lea.vmem (!%p261_p10), [#allocation3], %s291_s23  ;;  %vm1173_vm15 = vcmask (!%p261_p10), 122880  }
  0x16   : > { %v1277_v20 = vld [vmem:[%s1995_s1 + $0x48] sm:$0xff] (!%p261_p10)  ;;  %v1278_v21 = vld [vmem:[%s1995_s1 + $0x50] sm:$0xff] (!%p261_p10)  ;;  %v1279_v22 = vld [vmem:[%s1995_s1 + $0x58] sm:$0xff] (!%p261_p10) }
  0x17   : > { %v1289_v57 = vld [vmem:[%s1997_s3 + $0x20] sm:$0xff] (!%p261_p10)  ;;  %vm1881_vm9 = vmpackc.low (!%p261_p10), %vm686_vm3, %vm686_vm3 }
  0x18   : > { %1397 = vmatprep.mubr.msk.f32.mxu1 (!%p261_p10), %vm718_vm6, %v1289_v57  ;;  %v1031_v2 = vld [vmem:[%s1998_s4] sm:$0xff] (!%p261_p10) }
  0x19   : > { %s294_s16 = scalar_select %p293_p11, %s1667_s29, 1  ;;  %v1084_v6 = vld [vmem:[#allocation2] sm:$0x1] }
  0x1b   : > { %s1261_s17 = sshll.u32 %s294_s16, 2  ;;  %s1176_s16 = scalar_lea.sflag [#allocation4], %s291_s23 }
  0x1c   : > { %s299_s20 = scalar_lea.vmem %s1994_s0, %s1261_s17 }
  0x1d   : > { %v300_v1 = vld [vmem:[%s299_s20] sm:$0xf] }
  0x1e   : > { %302 = vrot.lane.b32.xlu0 %v300_v1, %s1677_s21 }
  0x90   : > { %v303_v3 = vpop.permute.xlu0 %302 }
  0x91   : > { %v306_v4 = vsel %vm305_vm1, 0.0, %v303_v3  ;;  %v1032_v3 = vld [vmem:[%s1998_s4 + $0x8] sm:$0xff] }
  0x92   : > { %527 = vrot.lane.b32.xlu1 %v306_v4, %s1678_s24  ;;  %320 = vrot.lane.b32.xlu0 %v306_v4, %s1679_s25  ;;  %s1318_s25 = sshll.u32 %s1667_s29, 4  ;;  %s1685_s29 = smov [#allocation3]  }
  0x93   : > { %s1947_s13 = scalar_lea.hbm %s2001_s7, %s1318_s25 }
  0x96   : > { %638 = vperm.xlu1 %1555, %v632_v5   ;;  %643 = vperm.xlu0 %1556, %v633_v7   ;;  %v1034_v5 = vld [vmem:[%s1998_s4 + $0x18] sm:$0xff] }
  0x9a   : > { %648 = vperm.xlu1 %1555, %v634_v8  }
  0x9e   : > { %653 = vperm.xlu1 %1555, %v635_v9  }
 0x104   : > { %v321_v10 = vpop.permute.xlu0 %320  ;;  %v528_v13 = vpop.permute.xlu1 %527 }
 0x105   : > { %1365 = vmatprep.subr.msk.mxu0 %vm335_vm2, %v321_v10 }
 0x106   : > { %1366 = vmatpush3.msk.msra.mxu0 %vm335_vm2, %v321_v10 }
 0x107   : > { %1368 = vmatmul.mubr.msk.f32.vlgmr.msra.gmra.mrb[0].mxu0 %vm322_vm0, %v1263_v11  ;;  %1373 = vmatprep.subr.msk.mxu0 %vm335_vm2, %v306_v4 }
 0x108   : > { %1374 = vmatpush3.msk.msra.mxu0 %vm335_vm2, %v306_v4  ;;  %1370 = vmatprep.mubr.msk.f32.mxu0 %vm322_vm0, %v1264_v12  ;;  %v1033_v4 = vld [vmem:[%s1998_s4 + $0x10] sm:$0xff] }
 0x109   : > { %1381 = vmatprep.subr.msk.mxu0 %vm335_vm2, %v528_v13 }
 0x10b   : > { %1371 = vmatmul.mubr.msk.f32.gmra.mrb[2].mxu0 %vm322_vm0, %v1265_v14 }
 0x10c   : > { %1375 = vmatprep.mubr.msk.f32.mxu0 %vm322_vm0, %v310_v15 }
 0x10f   : > { %1376 = vmatmul.mubr.msk.f32.vlgmr.msra.gmra.mrb[0].mxu0 %vm322_vm0, %v311_v16 }
 0x110   : > { %1382 = vmatpush3.msk.msra.mxu0 %vm335_vm2, %v528_v13  ;;  %1378 = vmatprep.mubr.msk.f32.mxu0 %vm322_vm0, %v312_v17  ;;  %v1290_v17 = vld [vmem:[%s1997_s3 + $0x28] sm:$0xff] }
 0x113   : > { %1379 = vmatmul.mubr.msk.f32.gmra.mrb[2].mxu0 %vm322_vm0, %v313_v18  ;;  %v1291_v18 = vld [vmem:[%s1997_s3 + $0x30] sm:$0xff] }
 0x114   : > { %1383 = vmatprep.mubr.msk.f32.mxu0 %vm322_vm0, %v1276_v19 }
 0x115   : > { %v639_v23 = vpop.permute.xlu1 %638  ;;  %v644_v25 = vpop.permute.xlu0 %643 }
 0x117   : > { %1384 = vmatmul.mubr.msk.f32.vlgmr.msra.gmra.mrb[0].mxu0 %vm322_vm0, %v1277_v20 }
 0x118   : > { %1386 = vmatprep.mubr.msk.f32.mxu0 %vm322_vm0, %v1278_v21 }
 0x119   : > { %v649_v24 = vpop.permute.xlu1 %648 }
 0x11b   : > { %1387 = vmatmul.mubr.msk.f32.gmra.mrb[2].mxu0 %vm322_vm0, %v1279_v22  ;;  %v1292_v22 = vld [vmem:[%s1997_s3 + $0x38] sm:$0xff] }
 0x11d   : > { %v654_v31 = vpop.permute.xlu1 %653 }
 0x1ea   : > { %v1385_v26 = vpop.f32.mrb[0].mxu0 }
 0x1eb   : > { %v657_v27 = vadd.f32 %v1385_v26, %v644_v25  ;;  %v609_v28 = vpop.f32.mrb[1].mxu0 }
 0x1ec   : > { %v656_v29 = vadd.f32 %v639_v23, %v609_v28  ;;  %v693_v23 = vld [vmem:[%s1997_s3] sm:$0xff]  ;;  %v695_v28 = vld [vmem:[%s1997_s3 + $0x10] sm:$0xff] }
 0x1ed   : > { %v665_v30 = vmin.f32 %v657_v27, 0.0  ;;  %vm661_vm4 = vcmp.gt.f32.partialorder %v657_v27, 0.0 }
 0x1ee   : > { %v664_v32 = vmin.f32 %v656_v29, 0.0  ;;  %v1388_v33 = vpop.f32.mrb[2].mxu0  ;;  %vm660_vm5 = vcmp.gt.f32.partialorder %v656_v29, 0.0 }
 0x1ef   : > { %v670_v34 = vmul.f32 1.442695, %v665_v30  ;;  %v659_v35 = vadd.f32 %v1388_v33, %v654_v31  ;;  %v619_v36 = vpop.f32.mrb[3].mxu0  ;;  %v696_v30 = vld [vmem:[%s1997_s3 + $0x18] sm:$0xff]  ;;  %v1305_v31 = vld [vmem:[%s1997_s3 + $0x40] sm:$0xff]  ;;  %v1307_v33 = vld [vmem:[%s1997_s3 + $0x50] sm:$0xff] }
 0x1f0   : > { %v668_v37 = vmul.f32 1.442695, %v664_v32  ;;  %v658_v38 = vadd.f32 %v649_v24, %v619_v36  ;;  %v1306_v32 = vld [vmem:[%s1997_s3 + $0x48] sm:$0xff]  ;;  %v1684_v36 = vmov 0.0  }
 0x1f1   : > { %1577 = vpow2.f32 %v670_v34  ;;  %v667_v39 = vmin.f32 %v659_v35, 0.0  ;;  %vm663_vm7 = vcmp.gt.f32.partialorder %v659_v35, 0.0  ;;  %v1308_v34 = vld [vmem:[%s1997_s3 + $0x58] sm:$0xff]  ;;  %1439 = vmatprep.mubr.msk.f32.mxu0 %vm1683_vm10, %v1684_v36 }
 0x1f2   : > { %1579 = vpow2.f32 %v668_v37  ;;  %v666_v40 = vmin.f32 %v658_v38, 0.0  ;;  %vm662_vm8 = vcmp.gt.f32.partialorder %v658_v38, 0.0 }
 0x1f3   : > { %v674_v41 = vmul.f32 1.442695, %v667_v39 }
 0x1f4   : > { %v672_v42 = vmul.f32 1.442695, %v666_v40 }
 0x1f5   : > { %1581 = vpow2.f32 %v674_v41 }
 0x1f6   : > { %1583 = vpow2.f32 %v672_v42 }
 0x1fb   : > { %v1578_v45 = vpop.eup %1577 }
 0x1fc   : > { %v1580_v46 = vpop.eup %1579  ;;  %v1286_v47 = vadd.f32 -1.0, %v1578_v45 }
 0x1fd   : > { %v1285_v48 = vadd.f32 -1.0, %v1580_v46 }
 0x1fe   : > { %v681_v49 = vsel %vm661_vm4, %v657_v27, %v1286_v47  ;;  %v694_v27 = vld [vmem:[%s1997_s3 + $0x8] sm:$0xff] }
 0x1ff   : > { %v1582_v50 = vpop.eup %1581  ;;  %v680_v51 = vsel %vm660_vm5, %v656_v29, %v1285_v48  ;;  %v690_v52 = vsel %vm686_vm3, %v681_v49, 0.0 }
 0x200   : > { %v1584_v53 = vpop.eup %1583  ;;  %v1450_v54 = vpack.c.bf16 %v681_v49, %v680_v51  ;;  %v1288_v55 = vadd.f32 -1.0, %v1582_v50  ;;  %v689_v56 = vsel %vm686_vm3, %v680_v51, 0.0 }
 0x201   : > { %v1287_v58 = vadd.f32 -1.0, %v1584_v53  ;;  %v1557_v59 = vpack.i.bf16 %v690_v52, %v689_v56 }
 0x202   : > { %v683_v60 = vsel %vm663_vm7, %v659_v35, %v1288_v55  ;;  %v1682_v35 = vmov 0.0|0.0  }
 0x203   : > { %v682_v61 = vsel %vm662_vm8, %v658_v38, %v1287_v58  ;;  %1558 = vrot.lane.b32.xlu0 %v1557_v59, %s1678_s24  ;;  %v692_v62 = vsel %vm686_vm3, %v683_v60, 0.0  ;;  %1470 = vmatprep.subr.bf16.mxu0 %v1682_v35 }
 0x204   : > { %v1456_v63 = vpack.c.bf16 %v683_v60, %v682_v61  ;;  %v691_v0 = vsel %vm686_vm3, %v682_v61, 0.0 }
 0x205   : > { %v1562_v1 = vpack.i.bf16 %v692_v62, %v691_v0 }
 0x207   : > { %1563 = vrot.lane.b32.xlu1 %v1562_v1, %s1678_s24  ;;  %1568 = vrot.lane.b32.xlu0 %v1557_v59, %s1681_s18  ;;  %s1189_s24 = sshll.u32 %s292_s6, 4  ;;  %s1949_s24 = int_to_ptr.vmem [resolvable:$true] %s1189_s24 }
 0x208   : > { %s1597_s17 = scalar_lea.vmem %s1949_s24, 16 }
 0x209   : > { %p1598_p12 = scmp.ne.s32.totalorder %s1949_s24, %s1597_s17 }
 0x20b   : > { %1573 = vrot.lane.b32.xlu1 %v1562_v1, %s1681_s18  ;;  %1037 = vperm.xlu0 %1556, %v1031_v2   ;;  %p1599_p13 = pnand %p1598_p12, %p1769_p4  ;;  %s1601_s18 = sshll.u32 %s1685_s29, 4  ;;  %s1602_s18 = int_to_ptr.vmem [resolvable:$false] %s1601_s18 }
 0x20c   : > { %s1603_s19 = scalar_lea.vmem %s1602_s18, 32  ;;  %p1604_p1 = scmp.lt.s32.totalorder %s1949_s24, %s1602_s18 }
 0x20d   : > { %p1600_p0 = pneg %p1599_p13  ;;  %p1605_p2 = scmp.lt.s32.totalorder %s1603_s19, %s1597_s17 }
 0x20f   : > { %1042 = vperm.xlu1 %1555, %v1032_v3   ;;  %1047 = vperm.xlu0 %1556, %v1033_v4   ;;  %p1606_p3 = por %p1605_p2, %p1604_p1 }
 0x211   : > { %p1607_p5 = pnand %p1606_p3, %p1600_p0 }
 0x213   : > { %1052 = vperm.xlu1 %1555, %v1034_v5   ;;  %1087 = vperm.xlu0 %1556, %v1084_v6  }
 0x275   : > { %v1559_v7 = vpop.permute.xlu0 %1558 }
 0x276   : > { %v1561_v8 = vunpack.i.h.bf16 %v1559_v7  ;;  %v1560_v9 = vunpack.i.l.bf16 %v1559_v7 }
 0x278   : > { %v1442_v10 = vpack.c.bf16 %v1561_v8, %v1560_v9  ;;  %v1083_v8 = vld [vmem:[%s1999_s5] sm:$0x1]  ;;  %v1091_v9 = vshrl.u32 %v307_v43, 7 }
 0x279   : > { %v1564_v11 = vpop.permute.xlu1 %1563  ;;  %v1569_v16 = vpop.permute.xlu0 %1568 }
 0x27a   : > { %v1566_v12 = vunpack.i.h.bf16 %v1564_v11  ;;  %v1565_v13 = vunpack.i.l.bf16 %v1564_v11  ;;  %1443 = vmatprep.subr.bf16.mxu1 %v1442_v10  ;;  %v1571_v19 = vunpack.i.h.bf16 %v1569_v16  ;;  %v1570_v20 = vunpack.i.l.bf16 %v1569_v16 }
 0x27b   : > { %1445 = vmatpush3.bf16.msra.mxu1 %v1442_v10  ;;  %v1092_v10 = vsub.s32 0, %v1091_v9 }
 0x27c   : > { %v1446_v14 = vpack.c.bf16 %v1566_v12, %v1565_v13  ;;  %v1462_v24 = vpack.c.bf16 %v1571_v19, %v1570_v20 }
 0x27d   : > { %v1574_v21 = vpop.permute.xlu1 %1573 }
 0x27e   : > { %1447 = vmatprep.subr.bf16.mxu1 %v1446_v14  ;;  %v1576_v25 = vunpack.i.h.bf16 %v1574_v21  ;;  %v1575_v26 = vunpack.i.l.bf16 %v1574_v21 }
 0x27f   : > { %1449 = vmatpush3.bf16.msra.mxu1 %v1446_v14 }
 0x280   : > { %1452 = vmatprep.subr.msk.bf16.mxu1 %vm1881_vm9, %v1450_v54  ;;  %v1466_v29 = vpack.c.bf16 %v1576_v25, %v1575_v26 }
 0x282   : > { %1398 = vmatmul.mubr.msk.f32.vlgmr.msra.gmra.mrb[0].mxu1 %vm718_vm6, %v1290_v17 }
 0x283   : > { %1455 = vmatpush3.bf16.msk.msra.mxu1 %vm1881_vm9, %v1450_v54  ;;  %1400 = vmatprep.mubr.msk.f32.mxu1 %vm718_vm6, %v1291_v18 }
 0x284   : > { %1458 = vmatprep.subr.msk.bf16.mxu1 %vm1881_vm9, %v1456_v63 }
 0x286   : > { %1401 = vmatmul.mubr.msk.f32.gmra.mrb[2].mxu1 %vm718_vm6, %v1292_v22 }
 0x287   : > { %1461 = vmatpush3.bf16.msk.msra.mxu1 %vm1881_vm9, %v1456_v63  ;;  %1411 = vmatprep.mubr.msk.f32.mxu1 %vm718_vm6, %v693_v23 }
 0x288   : > { %1463 = vmatprep.subr.bf16.mxu1 %v1462_v24 }
 0x28a   : > { %1412 = vmatmul.mubr.msk.f32.vlgmr.msra.gmra.mrb[0].mxu1 %vm718_vm6, %v694_v27  ;;  %v1038_v38 = vpop.permute.xlu0 %1037 }
 0x28b   : > { %1465 = vmatpush3.bf16.msra.mxu1 %v1462_v24  ;;  %1414 = vmatprep.mubr.msk.f32.mxu1 %vm718_vm6, %v695_v28 }
 0x28c   : > { %1467 = vmatprep.subr.bf16.mxu1 %v1466_v29 }
 0x28e   : > { %1415 = vmatmul.mubr.msk.f32.gmra.mrb[2].mxu1 %vm718_vm6, %v696_v30  ;;  %v1043_v37 = vpop.permute.xlu1 %1042  ;;  %v1048_v48 = vpop.permute.xlu0 %1047 }
 0x28f   : > { %1469 = vmatpush3.bf16.msra.mxu1 %v1466_v29  ;;  %1425 = vmatprep.mubr.msk.f32.mxu1 %vm718_vm6, %v1305_v31 }
 0x292   : > { %1426 = vmatmul.mubr.msk.f32.vlgmr.msra.gmra.mrb[0].mxu1 %vm718_vm6, %v1306_v32  ;;  %v1053_v45 = vpop.permute.xlu1 %1052  ;;  %v1088_v11 = vpop.permute.xlu0 %1087 }
 0x293   : > { %1428 = vmatprep.mubr.msk.f32.mxu1 %vm718_vm6, %v1307_v33  ;;  %v1093_v12 = vrot.slane %v1088_v11, %v1092_v10 }
 0x296   : > { %1429 = vmatmul.mubr.msk.f32.gmra.mrb[2].mxu1 %vm718_vm6, %v1308_v34 }
 0x365   : > { %v1427_v39 = vpop.f32.mrb[0].mxu1 }
 0x366   : > { %v1056_v40 = vadd.f32 %v1427_v39, %v1043_v37  ;;  %v1008_v41 = vpop.f32.mrb[1].mxu1 }
 0x367   : > { %v1055_v42 = vadd.f32 %v1038_v38, %v1008_v41 }
 0x368   : > { %v1064_v44 = vmin.f32 %v1056_v40, 0.0  ;;  %vm1060_vm11 = vcmp.gt.f32.partialorder %v1056_v40, 0.0 }
 0x369   : > { %v1063_v46 = vmin.f32 %v1055_v42, 0.0  ;;  %v1430_v47 = vpop.f32.mrb[2].mxu1  ;;  %vm1059_vm12 = vcmp.gt.f32.partialorder %v1055_v42, 0.0 }
 0x36a   : > { %v1069_v49 = vmul.f32 1.442695, %v1064_v44  ;;  %v1058_v50 = vadd.f32 %v1430_v47, %v1053_v45  ;;  %v1018_v51 = vpop.f32.mrb[3].mxu1 }
 0x36b   : > { %v1067_v52 = vmul.f32 1.442695, %v1063_v46  ;;  %v1057_v53 = vadd.f32 %v1048_v48, %v1018_v51 }
 0x36c   : > { %1585 = vpow2.f32 %v1069_v49  ;;  %v1066_v54 = vmin.f32 %v1058_v50, 0.0  ;;  %vm1062_vm13 = vcmp.gt.f32.partialorder %v1058_v50, 0.0 }
 0x36d   : > { %1587 = vpow2.f32 %v1067_v52  ;;  %v1065_v55 = vmin.f32 %v1057_v53, 0.0  ;;  %vm1061_vm14 = vcmp.gt.f32.partialorder %v1057_v53, 0.0 }
 0x36e   : > { %v1073_v56 = vmul.f32 1.442695, %v1066_v54 }
 0x36f   : > { %v1071_v57 = vmul.f32 1.442695, %v1065_v55 }
 0x370   : > { %1589 = vpow2.f32 %v1073_v56 }
 0x371   : > { %1591 = vpow2.f32 %v1071_v57 }
 0x376   : > { %v1586_v58 = vpop.eup %1585 }
 0x377   : > { %v1588_v59 = vpop.eup %1587  ;;  %v1314_v60 = vadd.f32 -1.0, %v1586_v58 }
 0x378   : > { %v1313_v61 = vadd.f32 -1.0, %v1588_v59 }
 0x379   : > { %v1080_v62 = vsel %vm1060_vm11, %v1056_v40, %v1314_v60 }
 0x37a   : > { %v1590_v63 = vpop.eup %1589  ;;  %v1079_v0 = vsel %vm1059_vm12, %v1055_v42, %v1313_v61 }
 0x37b   : > { %v1592_v1 = vpop.eup %1591  ;;  %v1471_v2 = vpack.c.bf16 %v1080_v62, %v1079_v0  ;;  %v1316_v3 = vadd.f32 -1.0, %v1590_v63 }
 0x37c   : > { %v1315_v4 = vadd.f32 -1.0, %v1592_v1 }
 0x37d   : > { %v1082_v5 = vsel %vm1062_vm13, %v1058_v50, %v1316_v3  ;;  %1472 = vmatpush3.bf16.msra.mxu0 %v1471_v2 }
 0x37e   : > { %v1081_v6 = vsel %vm1061_vm14, %v1057_v53, %v1315_v4  ;;  %1473 = vmatprep.subr.bf16.mxu0 %v1682_v35 }
 0x37f   : > { %v1474_v7 = vpack.c.bf16 %v1082_v5, %v1081_v6 }
 0x381   : > { %1475 = vmatpush3.bf16.msra.mxu0 %v1474_v7 }
 0x384   : > { %1440 = vmatmul.mubr.msk.f32.vlgmr.msra.gmra.mrb[4].mxu0 %vm718_vm6, %v1083_v8 }
 0x457   : > { %v1163_v13 = vpop.f32.mrb[4].mxu0 }
 0x458   : > { %v1164_v14 = vadd.f32 %v1163_v13, %v1093_v12  ;;  %v1441_v15 = vpop.f32.mrb[5].mxu0 }
 0x45a   : > { %v1167_v16 = vsub.f32 0.0, %v1164_v14 }
 0x45c   : > { %v1168_v17 = vmul.f32 1.442695, %v1167_v16 }
 0x45e   : > { %1593 = vpow2.f32 %v1168_v17 }
 0x468   : > { %v1594_v18 = vpop.eup %1593 }
 0x469   : > { %v1170_v19 = vadd.f32 1.0, %v1594_v18 }
 0x46b   : > { %1595 = vrcp.f32 %v1170_v19 }
 0x475   : > { %v1596_v43 = vpop.eup %1595 }
 0x476   : > { %1174 = vst.msk [vmem:[%s292_s6] sm:$0x1] %vm1173_vm15, %v1596_v43 }
 0x477   : > { %1610 = shalt.err (!%p1607_p5)
}
 0x478   : > { %s1611_s20 = scalar_lea.hbm %s1947_s13, 16  ;;  %s1615_s23 = scalar_lea.hbm %s2001_s7, 32 }
 0x479   : > { %p1612_p6 = scmp.ne.s32.totalorder %s1947_s13, %s1611_s20  ;;  %p1616_p10 = scmp.lt.u32.totalorder %s1947_s13, %s2001_s7 }
 0x47a   : > { %p1617_p11 = scmp.lt.u32.totalorder %s1615_s23, %s1611_s20  ;;  %p1619_p13 = scmp.lt.u32.totalorder %s1611_s20, %s1947_s13 }
 0x47b   : > { %p1613_p7 = pnand %p1612_p6, %p1769_p4 }
 0x47c   : > { %p1618_p12 = por %p1617_p11, %p1616_p10 }
 0x47d   : > { %p1614_p9 = pneg %p1613_p7 }
 0x47e   : > { %p1620_p0 = por %p1619_p13, %p1618_p12 }
 0x480   : > { %p1621_p1 = pnand %p1620_p0, %p1614_p9 }
 0x482   : > { %1624 = shalt.err (!%p1621_p1)
}
 0x483   : > { %1492 = dma.vmem_to_hbm [thread:$0]  (%p1769_p4), %s1949_s24, 16, %s1947_s13, %s1176_s16  }
 0x484 PF: > { %p1498_p2 = scmp.ge.s32.totalorder %s1675_s8, 2  ;;  %s1201_s9 = sand.u32 1, %s1655_s26  }
 0x485   : > { %s1202_s11 = scalar_lea.sflag [#allocation4], %s1201_s9 }
 0x486   : > { %p1495_p3 = pnand %p1498_p2, %p1776_p8 }
 0x488   : > { %1650 = dma.done.wait (!%p1495_p3), %s1202_s11, 16  }
 0x489   : > { %1652 = vsyncadd (!%p1495_p3), %s1202_s11, 4294967280  ;;  %s22_s8 = sadd.s32 1, %s1675_s8   ;;  %s2006_s26 = smov %s1659_s27 }
 0x48a   : > { %p19_p5 = scmp.ge.s32.totalorder %s22_s8, 4   ;;  %s2007_s27 = smov %s1663_s28 }
 0x48b   : > { %s2008_s28 = smov %s1782_s15  ;;  %s2009_s29 = smov %s1671_s30 }
 0x48c   : > { %s2010_s30 = smov %s2012_s10  ;;  %21 = sbr.rel (!%p19_p5) target bundleno = 7 (0x7), region = 87 }
 0x493   :  { %1206 = vsyncpa [#allocation4], 1 }
 0x494   :  { %1208 = vsyncpa [#allocation4 + $0x1], 1 }

</bundles_post_ra>
